<compile_context>
chip_gen: v7x
topology: tpu7x:2x2x1
jax: 0.10.0
libtpu: 0.0.40
codegen_flags: <defaults>
</compile_context>

<pallas_src>
import jax
import jax.numpy as jnp
from jax.experimental import pallas as pl
from jax.experimental.pallas import tpu as pltpu


def _round_up(x, m):
    return (x + m - 1) // m * m


def _round_down(x, m):
    return (x // m) * m


def _cdiv(a, b):
    return (a + b - 1) // b


def _vmem_capacity_bytes():
    """Physical VMEM per core; conservative (v7x-sized) fallback."""
    try:
        info = pltpu.get_tpu_info()
        cap = getattr(info, "vmem_capacity_bytes", None)
        if cap:
            return int(cap)
    except Exception:
        pass
    return 64 * 1024 * 1024


def _fast_recip(x):
    # EUP approximate reciprocal + one Newton step (~f32 accuracy).
    inv = pl.reciprocal(x, approx=True)
    return inv * (2.0 - x * inv)


def _scalar_to_out_tile(partial):
    # Place a scalar partial sum at [0, 0] of an (8, 128) tile, zeros elsewhere,
    # so the wrapper can simply jnp.sum() all per-tile outputs.
    r = jax.lax.broadcasted_iota(jnp.int32, (8, 128), 0)
    l = jax.lax.broadcasted_iota(jnp.int32, (8, 128), 1)
    return jnp.where((r == 0) & (l == 0), partial, 0.0)


# ----------------------------------------------------------------------------
# Kernels
# ----------------------------------------------------------------------------
def _make_flat_fused_kernel(num_classes, total_rows):
    """Small-C fused kernel on the flat interleaved layout.

    x block: (rb, 128) where lane l holds class (l % C) of example
    (global_row * (128//C) + l // C).  t block: (rb, 128//C) int32 targets.
    Emits one (8, 128) partial-sum tile per grid step.
    """
    C = num_classes
    Ex = 128 // C

    def kernel(x_ref, t_ref, out_ref):
        i = pl.program_id(0)
        rb = x_ref.shape[0]
        x = x_ref[...].astype(jnp.float32)                        # (rb, 128)
        lane = jax.lax.broadcasted_iota(jnp.int32, x.shape, 1)

        # Per-example max over each aligned group of C lanes (XOR butterfly on
        # the otherwise-idle XLU slot).  C | 128 => groups are lane-aligned.
        m = x
        s = 1
        while s < C:
            up = pltpu.roll(m, shift=128 - s, axis=1)             # m[l + s]
            dn = pltpu.roll(m, shift=s, axis=1)                   # m[l - s]
            m = jnp.maximum(m, jnp.where((lane & s) == 0, up, dn))
            s *= 2

        e = jnp.exp(x - m)                                        # EUP

        den = e
        s = 1
        while s < C:
            up = pltpu.roll(den, shift=128 - s, axis=1)
            dn = pltpu.roll(den, shift=s, axis=1)
            den = den + jnp.where((lane & s) == 0, up, dn)
            s *= 2

        p = e * _fast_recip(den)                                  # softmax probs

        # Expand per-example targets (rb, Ex) -> per-lane target class
        # (rb, 128) with one tiny exact 0/1 matmul on the idle MXU
        # (integer values <= C-1, single nonzero term per column => exact).
        j_io = jax.lax.broadcasted_iota(jnp.int32, (Ex, 128), 0)
        l_io = jax.lax.broadcasted_iota(jnp.int32, (Ex, 128), 1)
        expand = (j_io == l_io // C).astype(jnp.float32)
        t_lane = jnp.dot(t_ref[...].astype(jnp.float32), expand,
                         preferred_element_type=jnp.float32)
        cls = (lane % C).astype(jnp.float32)

        d = jnp.where(t_lane == cls, p - 1.0, p)                  # p - onehot
        dd = d * d

        # Mask the partial edge tile (rows beyond total_rows hold stale VMEM).
        row = jax.lax.broadcasted_iota(jnp.int32, x.shape, 0) + i * rb
        dd = jnp.where(row < total_rows, dd, 0.0)

        out_ref[...] = _scalar_to_out_tile(jnp.sum(dd))

    return kernel


def _make_rowmajor_fused_kernel(n_valid_rows):
    """Large-C fused kernel: logits (tb, C), targets (tb, 1) -> (8,128) partial."""

    def kernel(x_ref, t_ref, out_ref):
        i = pl.program_id(0)
        tb = x_ref.shape[0]
        x = x_ref[...].astype(jnp.float32)
        m = jnp.max(x, axis=1, keepdims=True)
        e = jnp.exp(x - m)
        den = jnp.sum(e, axis=1, keepdims=True)
        p = e * _fast_recip(den)
        cls = jax.lax.broadcasted_iota(jnp.int32, x.shape, 1)
        d = jnp.where(cls == t_ref[...], p - 1.0, p)
        dd = d * d
        # Mask rows of the partial edge tile.
        row = jax.lax.broadcasted_iota(jnp.int32, x.shape, 0) + i * tb
        dd = jnp.where(row < n_valid_rows, dd, 0.0)
        out_ref[...] = _scalar_to_out_tile(jnp.sum(dd))

    return kernel


def _rowmajor_per_example_kernel(x_ref, t_ref, out_ref):
    """Large-C per-example losses: logits (tb, C), targets (tb, 1) -> (tb, 1)."""
    x = x_ref[...].astype(jnp.float32)
    m = jnp.max(x, axis=1, keepdims=True)
    e = jnp.exp(x - m)
    den = jnp.sum(e, axis=1, keepdims=True)
    p = e * _fast_recip(den)
    cls = jax.lax.broadcasted_iota(jnp.int32, x.shape, 1)
    d = jnp.where(cls == t_ref[...], p - 1.0, p)
    # TODO(synk): the (tb, 1) store lowers to masked vst; absolute bytes are
    # tiny here but a lane-dense (1, tb) packing would remove them.
    out_ref[...] = jnp.sum(d * d, axis=1, keepdims=True)


def _lane_dense_per_example_kernel(x_ref, t_ref, out_ref):
    """Small-C per-example losses: logits (C, tb), targets (1, tb) -> (1, tb)."""
    x = x_ref[...].astype(jnp.float32)
    m = jnp.max(x, axis=0, keepdims=True)
    e = jnp.exp(x - m)
    den = jnp.sum(e, axis=0, keepdims=True)
    p = e * _fast_recip(den)
    cls = jax.lax.broadcasted_iota(jnp.int32, x.shape, 0)
    d = jnp.where(cls == t_ref[...], p - 1.0, p)
    out_ref[...] = jnp.sum(d * d, axis=0, keepdims=True)


# ----------------------------------------------------------------------------
# Wrapper
# ----------------------------------------------------------------------------
def brier_loss(logits, targets, num_classes, reduction="mean",
               vmem_budget_bytes=None):
    """Pallas implementation of BrierLoss.forward."""
    B, C = logits.shape
    assert C == num_classes
    targets = targets.astype(jnp.int32)
    itemsize = jnp.dtype(logits.dtype).itemsize
    sub_mult = max(8, 32 // itemsize)        # dtype-aware sublane alignment

    cap = _vmem_capacity_bytes()
    # Total VMEM we aim to occupy (double-buffered inputs + live f32
    # intermediates).  Per-generation: ~21 MiB on v7x (64 MiB VMEM),
    # ~40 MiB on v5e/v6e (128 MiB VMEM).  `vmem_budget_bytes` is a test knob.
    budget = vmem_budget_bytes if vmem_budget_bytes is not None else min(
        cap // 3, 40 * 1024 * 1024)
    vmem_limit = max(32 * 1024 * 1024,
                     min(cap - 16 * 1024 * 1024, 96 * 1024 * 1024))
    cparams = pltpu.CompilerParams(
        # TODO(synk): verify on v7x that "parallel" shards the grid across both
        # TensorCores; otherwise switch to CORE_PARALLEL / core_map.
        dimension_semantics=("parallel",),
        vmem_limit_bytes=vmem_limit,
    )

    fused = reduction in ("mean", "sum")

    # ---------------- small C, fused mean/sum: flat interleaved path --------
    if fused and C < 128 and 128 % C == 0 and B % (128 // C) == 0:
        Ex = 128 // C
        total_rows = (B * C) // 128
        # Per flat row of 128 lanes: double-buffered logits + double-buffered
        # lane-padded targets + ~8 f32 rows of live intermediates.
        per_row = 2 * 128 * itemsize + 2 * 512 + 8 * 512
        rb = _round_down(max(sub_mult, budget // per_row), sub_mult)
        if total_rows <= sub_mult:
            rb = total_rows
        else:
            rb = max(sub_mult, min(rb, _round_down(total_rows, sub_mult)))
        ntiles = _cdiv(total_rows, rb)

        x_flat = logits.reshape(total_rows, 128)   # free bitcast, no HBM pass
        t2 = targets.reshape(total_rows, Ex)       # free bitcast

        partials = pl.pallas_call(
            _make_flat_fused_kernel(C, total_rows),
            out_shape=jax.ShapeDtypeStruct((ntiles * 8, 128), jnp.float32),
            grid=(ntiles,),
            in_specs=[
                pl.BlockSpec((rb, 128), lambda i: (i, 0)),
                pl.BlockSpec((rb, Ex), lambda i: (i, 0)),
            ],
            out_specs=pl.BlockSpec((8, 128), lambda i: (i, 0)),
            compiler_params=cparams,
        )(x_flat, t2)
        total = jnp.sum(partials)
        return total / B if reduction == "mean" else total

    # ---------------- large C: row-major path --------------------------------
    if C >= 128:
        # TODO(synk): for very large C where one (tb, C) tile cannot fit VMEM,
        # add a class-tiling grid axis with online-softmax accumulation.
        per_row = 2 * C * itemsize + 2 * 512 + 6 * C * 4
        tb = _round_down(max(sub_mult, budget // per_row), sub_mult)
        if B <= sub_mult:
            tb = B
        else:
            tb = max(sub_mult, min(tb, _round_down(B, sub_mult)))
        ntiles = _cdiv(B, tb)
        t2 = targets.reshape(B, 1)

        if fused:
            partials = pl.pallas_call(
                _make_rowmajor_fused_kernel(B),
                out_shape=jax.ShapeDtypeStruct((ntiles * 8, 128), jnp.float32),
                grid=(ntiles,),
                in_specs=[
                    pl.BlockSpec((tb, C), lambda i: (i, 0)),
                    pl.BlockSpec((tb, 1), lambda i: (i, 0)),
                ],
                out_specs=pl.BlockSpec((8, 128), lambda i: (i, 0)),
                compiler_params=cparams,
            )(logits, t2)
            total = jnp.sum(partials)
            return total / B if reduction == "mean" else total

        per_example = pl.pallas_call(
            _rowmajor_per_example_kernel,
            out_shape=jax.ShapeDtypeStruct((B, 1), jnp.float32),
            grid=(ntiles,),
            in_specs=[
                pl.BlockSpec((tb, C), lambda i: (i, 0)),
                pl.BlockSpec((tb, 1), lambda i: (i, 0)),
            ],
            out_specs=pl.BlockSpec((tb, 1), lambda i: (i, 0)),
            compiler_params=cparams,
        )(logits, t2)[:, 0]
    else:
        # ---------------- small-C fallback (per-example) ---------------------
        # Used for reduction='none' and for class counts / batch sizes whose
        # interleaved groups don't tile 128 lanes (e.g. C=10, 100 or ragged B).
        # Pays one extra HBM pass for the XLA transpose.
        # TODO(synk): extend the flat interleaved path to non-power-of-2 C and
        # ragged B so this transpose disappears entirely.
        per_col = 2 * _round_up(C, 8) * itemsize + 2 * 8 * 4 + 6 * 8 * 4
        tb = _round_down(max(128, budget // per_col), 128)
        if B <= 128:
            tb = B
        else:
            tb = max(128, min(tb, _round_down(B, 128)))
        ntiles = _cdiv(B, tb)

        xT = logits.T                      # one extra HBM pass (fallback only)
        t2 = targets.reshape(1, B)
        per_example = pl.pallas_call(
            _lane_dense_per_example_kernel,
            out_shape=jax.ShapeDtypeStruct((1, B), jnp.float32),
            grid=(ntiles,),
            in_specs=[
                pl.BlockSpec((C, tb), lambda i: (0, i)),
                pl.BlockSpec((1, tb), lambda i: (0, i)),
            ],
            out_specs=pl.BlockSpec((1, tb), lambda i: (0, i)),
            compiler_params=cparams,
        )(xT, t2)[0]

    if reduction == "mean":
        return jnp.mean(per_example)
    if reduction == "sum":
        return jnp.sum(per_example)
    return per_example


# ----------------------------------------------------------------------------
# Pure-JAX reference + self-test
# ----------------------------------------------------------------------------
def brier_loss_ref(logits, targets, num_classes, reduction="mean"):
    onehot = jax.nn.one_hot(targets, num_classes, dtype=jnp.float32)
    p = jax.nn.softmax(logits.astype(jnp.float32), axis=1)
    loss = jnp.sum((p - onehot) ** 2, axis=1)
    if reduction == "mean":
        return jnp.mean(loss)
    if reduction == "sum":
        return jnp.sum(loss)
    return loss


def _check(got, want, tag, atol=1e-4, rtol=1e-4):
    got = jax.block_until_ready(got)
    assert jnp.allclose(got, want, atol=atol, rtol=rtol), (tag, got, want)


if __name__ == "__main__":
    key = jax.random.PRNGKey(0)
    ks = jax.random.split(key, 8)

    # 1) Tiny shapes matching the module's typical usage (small-C fallback path).
    C1, B1 = 4, 8
    x1 = jax.random.normal(ks[0], (B1, C1), dtype=jnp.float32)
    t1 = jax.random.randint(ks[1], (B1,), 0, C1, dtype=jnp.int32)
    for red in ("mean", "sum", "none"):
        _check(brier_loss(x1, t1, C1, red), brier_loss_ref(x1, t1, C1, red),
               f"tiny-{red}")

    # 2) Small-C fused path: flat interleaved layout (no transpose, no pad).
    C2, B2 = 4, 4096
    x2 = jax.random.normal(ks[2], (B2, C2), dtype=jnp.float32)
    t2 = jax.random.randint(ks[3], (B2,), 0, C2, dtype=jnp.int32)
    _check(brier_loss(x2, t2, C2, "mean"),
           brier_loss_ref(x2, t2, C2, "mean"), "flat-mean-f32")
    x2b = x2.astype(jnp.bfloat16)   # bf16 stays bf16 in HBM, upcast in-kernel
    _check(brier_loss(x2b, t2, C2, "mean"),
           brier_loss_ref(x2b, t2, C2, "mean"), "flat-mean-bf16")
    _check(brier_loss(x2, t2, C2, "none"),
           brier_loss_ref(x2, t2, C2, "none"), "smallC-none")

    # Multi-tile grid with a masked partial edge block on the flat path.
    C3, B3 = 4, 4064
    x3 = jax.random.normal(ks[4], (B3, C3), dtype=jnp.float32)
    t3 = jax.random.randint(ks[5], (B3,), 0, C3, dtype=jnp.int32)
    _check(brier_loss(x3, t3, C3, "sum", vmem_budget_bytes=256 * 1024),
           brier_loss_ref(x3, t3, C3, "sum"), "flat-sum-edge")

    # 3) Row-major path (C >= 128): fused partial sums with a masked edge
    #    tile, plus the per-example ('none') variant.
    C4, B4 = 256, 1003
    x4 = jax.random.normal(ks[6], (B4, C4), dtype=jnp.float32)
    t4 = jax.random.randint(ks[7], (B4,), 0, C4, dtype=jnp.int32)
    _check(brier_loss(x4, t4, C4, "sum", vmem_budget_bytes=512 * 1024),
           brier_loss_ref(x4, t4, C4, "sum"), "rowmajor-sum-edge")
    _check(brier_loss(x4, t4, C4, "mean"),
           brier_loss_ref(x4, t4, C4, "mean"), "rowmajor-mean")
    _check(brier_loss(x4, t4, C4, "none"),
           brier_loss_ref(x4, t4, C4, "none"), "rowmajor-none")

    print("KERNEL_OK")
</pallas_src>

<mosaic_0001>
module attributes {stable_mosaic.version = 11 : i64} {
  func.func @_lane_dense_per_example_kernel(%arg0: i32, %arg1: memref<4x8xf32, #tpu.memory_space<vmem>>, %arg2: memref<1x8xi32, #tpu.memory_space<vmem>>, %arg3: memref<1x8xf32, #tpu.memory_space<vmem>>) attributes {dimension_semantics = [#tpu.dimension_semantics<parallel>], iteration_bounds = array<i64: 1>, scalar_prefetch = 0 : i64, scratch_operands = 0 : i64, tpu.core_type = #tpu.core_type<tc>, window_params = [{transform_indices = @transform_0, window_bounds = array<i64: 4, 8>}, {transform_indices = @transform_1, window_bounds = array<i64: 1, 8>}, {transform_indices = @transform_2, window_bounds = array<i64: 1, 8>}]} {
    %c0 = arith.constant 0 : index
    %c0_0 = arith.constant 0 : index
    %0 = vector.load %arg1[%c0, %c0_0] : memref<4x8xf32, #tpu.memory_space<vmem>>, vector<4x8xf32>
    %cst = arith.constant dense<0xFF800000> : vector<8xf32>
    %1 = vector.multi_reduction <maximumf>, %0, %cst [0] : vector<4x8xf32> to vector<8xf32>
    %2 = vector.shape_cast %1 : vector<8xf32> to vector<1x8xf32>
    %3 = vector.broadcast %2 : vector<1x8xf32> to vector<4x8xf32>
    %4 = arith.subf %0, %3 : vector<4x8xf32>
    %5 = math.exp %4 : vector<4x8xf32>
    %cst_1 = arith.constant dense<0.000000e+00> : vector<8xf32>
    %6 = vector.multi_reduction <add>, %5, %cst_1 [0] : vector<4x8xf32> to vector<8xf32>
    %7 = vector.shape_cast %6 : vector<8xf32> to vector<1x8xf32>
    %8 = tpu.reciprocal %7 {approx = true} : vector<1x8xf32> -> vector<1x8xf32>
    %9 = arith.mulf %7, %8 : vector<1x8xf32>
    %cst_2 = arith.constant 2.000000e+00 : f32
    %10 = vector.broadcast %cst_2 : f32 to vector<1x8xf32>
    %11 = arith.subf %10, %9 : vector<1x8xf32>
    %12 = arith.mulf %8, %11 : vector<1x8xf32>
    %13 = vector.broadcast %12 : vector<1x8xf32> to vector<4x8xf32>
    %14 = arith.mulf %5, %13 : vector<4x8xf32>
    %15 = tpu.iota {dimensions = array<i32: 0>} : vector<4x8xi32>
    %c0_3 = arith.constant 0 : index
    %c0_4 = arith.constant 0 : index
    %16 = vector.load %arg2[%c0_3, %c0_4] : memref<1x8xi32, #tpu.memory_space<vmem>>, vector<1x8xi32>
    %17 = vector.broadcast %16 : vector<1x8xi32> to vector<4x8xi32>
    %18 = arith.cmpi eq, %15, %17 : vector<4x8xi32>
    %cst_5 = arith.constant 1.000000e+00 : f32
    %19 = vector.broadcast %cst_5 : f32 to vector<4x8xf32>
    %20 = arith.subf %14, %19 : vector<4x8xf32>
    %21 = arith.select %18, %20, %14 : vector<4x8xi1>, vector<4x8xf32>
    %22 = arith.mulf %21, %21 : vector<4x8xf32>
    %cst_6 = arith.constant dense<0.000000e+00> : vector<8xf32>
    %23 = vector.multi_reduction <add>, %22, %cst_6 [0] : vector<4x8xf32> to vector<8xf32>
    %24 = vector.shape_cast %23 : vector<8xf32> to vector<1x8xf32>
    %c0_7 = arith.constant 0 : index
    %c0_8 = arith.constant 0 : index
    %25 = vector.load %arg3[%c0_7, %c0_8] : memref<1x8xf32, #tpu.memory_space<vmem>>, vector<1x8xf32>
    tpu.vector_store %arg3[%c0_7, %c0_8], %24 {strides = array<i32>} : memref<1x8xf32, #tpu.memory_space<vmem>>, vector<1x8xf32>,
    return
  }
  func.func @transform_0(%arg0: i32) -> (i32, i32) {
    %c0_i32 = arith.constant 0 : i32
    %c0_i32_0 = arith.constant 0 : i32
    return %c0_i32, %arg0 : i32, i32
  }
  func.func @transform_1(%arg0: i32) -> (i32, i32) {
    %c0_i32 = arith.constant 0 : i32
    %c0_i32_0 = arith.constant 0 : i32
    return %c0_i32, %arg0 : i32, i32
  }
  func.func @transform_2(%arg0: i32) -> (i32, i32) {
    %c0_i32 = arith.constant 0 : i32
    %c0_i32_0 = arith.constant 0 : i32
    return %c0_i32, %arg0 : i32, i32
  }
}

</mosaic_0001>

<bundles_post_ra>
// kernel: tpu_custom_call.1
= control target key start
LH: loop header
LB: loop body
LE: loop exit
PB: predicated region body
PF: predicated region fallthrough
CT: control target
= control target key end

     0   :  { %7 = vsyncpa [#allocation3], 0  ;;  %s186_s0 = inlined_call_operand.hbm [shape: f32[4,8], index: 0, kind: input, shape index: {}]   ;;  %s187_s1 = inlined_call_operand.vmem [shape: s32[1,8], index: 1, kind: input, shape index: {}]   ;;  %s188_s2 = inlined_call_operand.hbm [shape: f32[1,8], index: 2, kind: output, shape index: {}]  }
   0x1   :  { %8 = vsyncpa [#allocation4], 0  ;;  %s139_s9 = smov [#allocation2]   ;;  %s91_s13 = scalar_lea.hbm %s186_s0, 64 }
   0x2   :  { %s15_s10 = sshll.u32 %s139_s9, 4  ;;  %p92_p0 = scmp.ne.s32.totalorder %s186_s0, %s91_s13  ;;  %s16_s10 = int_to_ptr.vmem [resolvable:$true] %s15_s10 }
   0x3   :  { %p95_p1 = scmp.lt.u32.totalorder %s91_s13, %s186_s0 }
   0x5   :  { %p97_p2 = pnand %p95_p1, %p92_p0 }
   0x7   :  { %100 = shalt.err (!%p97_p2)
}
   0x8   :  { %s101_s18 = scalar_lea.vmem %s16_s10, 64  ;;  %p106_p4 = scmp.lt.s32.totalorder %s16_s10, %s16_s10 }
   0x9   :  { %p102_p3 = scmp.ne.s32.totalorder %s16_s10, %s101_s18  ;;  %p107_p5 = scmp.lt.s32.totalorder %s101_s18, %s101_s18 }
   0xb   :  { %p108_p6 = por %p107_p5, %p106_p4 }
   0xd   :  { %p109_p7 = pnand %p108_p6, %p102_p3 }
   0xf   :  { %112 = shalt.err (!%p109_p7)
}
  0x10   :  { %18 = dma.hbm_to_vmem [thread:$0]  %s186_s0, 64, %s16_s10, [#allocation3]  }
  0x11   :  { %135 = dma.done.wait [#allocation3], 64  }
  0x12   :  { %136 = vsyncadd [#allocation3], 4294967232  ;;  %vm25_vm0 = vcmask 60416   ;;  %v24_v0 = vld [vmem:[#allocation2] sm:$0xf]  ;;  %v48_v19 = vlaneseq  ;;  %s140_s22 = smov [#allocation5]  }
  0x13   :  { %v26_v1 = vsel %vm25_vm0, %v24_v0, -inf  ;;  %v83_v24 = vld [vmem:[%s187_s1] ss:$0 sm:$0xff]  ;;  %s74_s23 = sshll.u32 %s140_s22, 4  ;;  %vm66_vm2 = vcmask 57344   ;;  %s75_s23 = int_to_ptr.vmem [resolvable:$true] %s74_s23 }
  0x14   :  { %v27_v2 = vrot.slane %v26_v1, 4  ;;  %v49_v22 = vshrl.u32 %v48_v19, 7  ;;  %s113_s24 = scalar_lea.vmem %s75_s23, 16  ;;  %s117_s1 = scalar_lea.vmem %s75_s23, 32 }
  0x15   :  { %p114_p8 = scmp.ne.s32.totalorder %s75_s23, %s113_s24  ;;  %p118_p9 = scmp.lt.s32.totalorder %s75_s23, %s75_s23 }
  0x16   :  { %v28_v3 = vmax.f32 %v26_v1, %v27_v2  ;;  %vm55_vm1 = vcmp.eq.s32.totalorder %v49_v22, %v83_v24  ;;  %p119_p10 = scmp.lt.s32.totalorder %s117_s1, %s113_s24 }
  0x18   :  { %v29_v4 = vrot.slane %v28_v3, 2  ;;  %p120_p11 = por %p119_p10, %p118_p9 }
  0x1a   :  { %v30_v5 = vmax.f32 %v28_v3, %v29_v4  ;;  %p121_p12 = pnand %p120_p11, %p114_p8 }
  0x1c   :  { %v31_v6 = vrot.slane %v30_v5, 1 }
  0x1e   :  { %v32_v7 = vmax.f32 %v30_v5, %v31_v6 }
  0x20   :  { %v33_v8 = vsub.f32 %v24_v0, %v32_v7 }
  0x22   :  { %v34_v9 = vmul.f32 1.442695, %v33_v8 }
  0x24   :  { %87 = vpow2.f32 %v34_v9 }
  0x2e   :  { %v88_v10 = vpop.eup %87 }
  0x2f   :  { %v36_v11 = vsel %vm25_vm0, %v88_v10, 0.0 }
  0x30   :  { %v37_v12 = vrot.slane %v36_v11, 4 }
  0x32   :  { %v38_v13 = vadd.f32 %v37_v12, %v36_v11 }
  0x34   :  { %v39_v14 = vrot.slane %v38_v13, 2 }
  0x36   :  { %v40_v15 = vadd.f32 %v39_v14, %v38_v13 }
  0x38   :  { %v41_v16 = vrot.slane %v40_v15, 1 }
  0x3a   :  { %v42_v17 = vadd.f32 %v41_v16, %v40_v15 }
  0x3c   :  { %89 = vrcp.f32 %v42_v17 }
  0x46   :  { %v90_v18 = vpop.eup %89 }
  0x47   :  { %v44_v20 = vmul.f32 %v90_v18, %v42_v17 }
  0x49   :  { %v45_v21 = vsub.f32 2.0, %v44_v20 }
  0x4b   :  { %v46_v23 = vmul.f32 %v90_v18, %v45_v21 }
  0x4d   :  { %v47_v25 = vmul.f32 %v88_v10, %v46_v23 }
  0x4f   :  { %v84_v26 = vadd.f32 -1.0, %v47_v25 }
  0x51   :  { %v57_v27 = vsel %vm55_vm1, %v84_v26, %v47_v25 }
  0x52   :  { %v58_v28 = vmul.f32 %v57_v27, %v57_v27 }
  0x54   :  { %v59_v29 = vsel %vm25_vm0, %v58_v28, 0.0 }
  0x55   :  { %v60_v30 = vrot.slane %v59_v29, 4 }
  0x57   :  { %v61_v31 = vadd.f32 %v60_v30, %v59_v29 }
  0x59   :  { %v62_v32 = vrot.slane %v61_v31, 2 }
  0x5b   :  { %v63_v33 = vadd.f32 %v62_v32, %v61_v31 }
  0x5d   :  { %v64_v34 = vrot.slane %v63_v33, 1 }
  0x5f   :  { %v65_v35 = vadd.f32 %v64_v34, %v63_v33 }
  0x61   :  { %67 = vst.msk [vmem:[#allocation5] sm:$0x1] %vm66_vm2, %v65_v35 }
  0x62   :  { %124 = shalt.err (!%p121_p12)
}
  0x63   :  { %s125_s27 = scalar_lea.hbm %s188_s2, 16 }
  0x64   :  { %p126_p13 = scmp.ne.s32.totalorder %s188_s2, %s125_s27  ;;  %p129_p0 = scmp.lt.u32.totalorder %s125_s27, %s188_s2 }
  0x66   :  { %p131_p1 = pnand %p129_p0, %p126_p13 }
  0x68   :  { %134 = shalt.err (!%p131_p1)
}
  0x69   :  { %77 = dma.vmem_to_hbm [thread:$0]  %s75_s23, 16, %s188_s2, [#allocation4]  }
  0x6a   :  { %137 = dma.done.wait [#allocation4], 16  }
  0x6b   :  { %138 = vsyncadd [#allocation4], 4294967280 }
  0x6c   :  { %81 = vsyncpa [#allocation3], 1 }
  0x6d   :  { %82 = vsyncpa [#allocation4], 1 }

</bundles_post_ra>
